<compile_context>
chip_gen: v7x
topology: tpu7x:2x2x1
jax: 0.10.0
libtpu: 0.0.40
codegen_flags: <defaults>
</compile_context>

<pallas_src>
import jax
import jax.numpy as jnp
from jax.experimental import pallas as pl
from jax.experimental.pallas import tpu as pltpu


# ----------------------------------------------------------------------------
# Parameter-slab layout (row offsets aligned to 8 sublanes; zero-padded).
# Weights stored transposed: (out_features, in_features).
# Biases live in a (20, 6) block starting at row _BIAS_R, one column per layer.
# ----------------------------------------------------------------------------
_W1_R, _W2_R, _W3_R, _W4_R, _W5_R, _W6_R = 0, 16, 24, 32, 40, 56
_BIAS_R = 80
_SLAB_ROWS = 104
_SLAB_COLS = 32

_LANE = 128
_TB_CAP = 8192   # per-step batch tile cap (keeps double-buffered VMEM ~24 MiB)


def _round_up(n, m):
    return ((n + m - 1) // m) * m


def _choose_tile(batch):
    """Batch tile: multiple of 128, >=2 grid steps when possible, capped."""
    if batch <= _LANE:
        return _LANE
    half = _round_up((batch + 1) // 2, _LANE)   # aim for >=2 steps (v7x megacore)
    return min(half, _TB_CAP)


def _ae_kernel(p_ref, x_ref, dec_ref, enc_ref):
    f32 = jnp.float32
    x = x_ref[...].T                                   # (20, TB): batch on lanes

    # Static slices of the resident parameter slab (free views).
    w1 = p_ref[_W1_R:_W1_R + 10, 0:20]                 # (10, 20)
    w2 = p_ref[_W2_R:_W2_R + 4, 0:10]                  # (4, 10)
    w3 = p_ref[_W3_R:_W3_R + 2, 0:4]                   # (2, 4)
    w4 = p_ref[_W4_R:_W4_R + 4, 0:2]                   # (4, 2)
    w5 = p_ref[_W5_R:_W5_R + 10, 0:4]                  # (10, 4)
    w6 = p_ref[_W6_R:_W6_R + 20, 0:10]                 # (20, 10)

    b1 = p_ref[_BIAS_R:_BIAS_R + 10, 0:1]              # (10, 1)
    b2 = p_ref[_BIAS_R:_BIAS_R + 4, 1:2]               # (4, 1)
    b3 = p_ref[_BIAS_R:_BIAS_R + 2, 2:3]               # (2, 1)
    b4 = p_ref[_BIAS_R:_BIAS_R + 4, 3:4]               # (4, 1)
    b5 = p_ref[_BIAS_R:_BIAS_R + 10, 4:5]              # (10, 1)
    b6 = p_ref[_BIAS_R:_BIAS_R + 20, 5:6]              # (20, 1)

    # ---- encoder ----
    h1 = jnp.maximum(jnp.dot(w1, x, preferred_element_type=f32) + b1, 0.0)   # (10, TB)
    h2 = jnp.maximum(jnp.dot(w2, h1, preferred_element_type=f32) + b2, 0.0)  # (4, TB)
    enc = jnp.dot(w3, h2, preferred_element_type=f32) + b3                   # (2, TB)

    # ---- decoder ----
    d1 = jnp.maximum(jnp.dot(w4, enc, preferred_element_type=f32) + b4, 0.0)  # (4, TB)
    d2 = jnp.maximum(jnp.dot(w5, d1, preferred_element_type=f32) + b5, 0.0)   # (10, TB)
    dec = jnp.dot(w6, d2, preferred_element_type=f32) + b6                    # (20, TB)

    # Store in the caller's natural (batch, feature) layout.
    dec_ref[...] = dec.T                               # (TB, 20)
    enc_ref[...] = enc.T                               # (TB, 2)


def _pack_params(params):
    """Pack all weights (transposed) and biases into one f32 slab (one DMA)."""
    slab = jnp.zeros((_SLAB_ROWS, _SLAB_COLS), jnp.float32)
    row_offsets = (_W1_R, _W2_R, _W3_R, _W4_R, _W5_R, _W6_R)
    for r0, (w, _) in zip(row_offsets, params):
        wt = w.T                                       # (out, in)
        slab = slab.at[r0:r0 + wt.shape[0], :wt.shape[1]].set(wt)
    for j, (_, b) in enumerate(params):
        col = b.reshape(-1, 1)                         # (out, 1)
        slab = slab.at[_BIAS_R:_BIAS_R + col.shape[0], j:j + 1].set(col)
    return slab


def ae_forward(x, params):
    """Fused autoencoder forward. x: (B, 20) f32. Returns (decoded, encoded)."""
    B = x.shape[0]
    TB = _choose_tile(B)
    grid = (pl.cdiv(B, TB),)                           # ragged last block is masked

    slab = _pack_params(params)

    flops = 2 * B * (20 * 10 + 10 * 4 + 4 * 2 + 2 * 4 + 4 * 10 + 10 * 20)
    bytes_accessed = 4 * (B * (20 + 20 + 2) + _SLAB_ROWS * _SLAB_COLS)

    decoded, encoded = pl.pallas_call(
        _ae_kernel,
        out_shape=(
            jax.ShapeDtypeStruct((B, 20), jnp.float32),   # decoded
            jax.ShapeDtypeStruct((B, 2), jnp.float32),    # encoded
        ),
        grid=grid,
        in_specs=[
            # Parameter slab: constant index_map -> DMA'd once, VMEM-resident.
            pl.BlockSpec((_SLAB_ROWS, _SLAB_COLS), lambda i: (0, 0)),
            # Input tile: batch (sublane) axis tiled by the grid, natural layout.
            pl.BlockSpec((TB, 20), lambda i: (i, 0)),
        ],
        out_specs=(
            pl.BlockSpec((TB, 20), lambda i: (i, 0)),
            pl.BlockSpec((TB, 2), lambda i: (i, 0)),
        ),
        compiler_params=pltpu.CompilerParams(
            dimension_semantics=("parallel",),
            vmem_limit_bytes=48 * 1024 * 1024,
        ),
        cost_estimate=pl.CostEstimate(
            flops=flops, transcendentals=0, bytes_accessed=bytes_accessed),
    )(slab, x)

    return decoded, encoded


def init_params(key):
    """Deterministic init matching PyTorch Linear shapes (stored as (in, out))."""
    dims = [(20, 10), (10, 4), (4, 2),    # encoder
            (2, 4), (4, 10), (10, 20)]    # decoder
    params = []
    for i, (fan_in, fan_out) in enumerate(dims):
        kw, kb = jax.random.split(jax.random.fold_in(key, i))
        bound = 1.0 / (fan_in ** 0.5)
        w = jax.random.uniform(kw, (fan_in, fan_out), jnp.float32, -bound, bound)
        b = jax.random.uniform(kb, (fan_out,), jnp.float32, -bound, bound)
        params.append((w, b.reshape(1, fan_out)))
    return params


def ae_reference(x, params):
    """Pure-JAX reference for correctness checking."""
    (w1, b1), (w2, b2), (w3, b3), (w4, b4), (w5, b5), (w6, b6) = params
    h = jnp.maximum(x @ w1 + b1, 0.0)
    h = jnp.maximum(h @ w2 + b2, 0.0)
    enc = h @ w3 + b3
    d = jnp.maximum(enc @ w4 + b4, 0.0)
    d = jnp.maximum(d @ w5 + b5, 0.0)
    dec = d @ w6 + b6
    return dec, enc


if __name__ == "__main__":
    key = jax.random.PRNGKey(0)
    k_x, k_p = jax.random.split(key)

    B = 300          # -> TB=256, grid=(2,): exercises multi-step grid + ragged tail
    x = jax.random.normal(k_x, (B, 20), jnp.float32)
    params = init_params(k_p)

    fwd = jax.jit(ae_forward)
    decoded, encoded = fwd(x, params)
    jax.block_until_ready((decoded, encoded))

    dec_ref, enc_ref = ae_reference(x, params)
    assert decoded.shape == (B, 20) and encoded.shape == (B, 2)
    assert jnp.allclose(encoded, enc_ref, atol=1e-4, rtol=1e-4)
    assert jnp.allclose(decoded, dec_ref, atol=1e-4, rtol=1e-4)

    print("KERNEL_OK")
</pallas_src>

<mosaic_0001>
module attributes {stable_mosaic.version = 11 : i64} {
  func.func @_ae_kernel(%arg0: i32, %arg1: memref<104x32xf32, #tpu.memory_space<vmem>>, %arg2: memref<256x20xf32, #tpu.memory_space<vmem>>, %arg3: memref<256x20xf32, #tpu.memory_space<vmem>>, %arg4: memref<256x2xf32, #tpu.memory_space<vmem>>) attributes {dimension_semantics = [#tpu.dimension_semantics<parallel>], iteration_bounds = array<i64: 2>, scalar_prefetch = 0 : i64, scratch_operands = 0 : i64, tpu.core_type = #tpu.core_type<tc>, window_params = [{pipeline_mode = #tpu.pipeline_mode<synchronous>, transform_indices = @transform_0, window_bounds = array<i64: 104, 32>}, {transform_indices = @transform_1, window_bounds = array<i64: 256, 20>}, {transform_indices = @transform_2, window_bounds = array<i64: 256, 20>}, {transform_indices = @transform_3, window_bounds = array<i64: 256, 2>}]} {
    %c0 = arith.constant 0 : index
    %c0_0 = arith.constant 0 : index
    %0 = vector.load %arg2[%c0, %c0_0] : memref<256x20xf32, #tpu.memory_space<vmem>>, vector<256x20xf32>
    %1 = tpu.transpose %0, [1, 0] : vector<256x20xf32> -> vector<20x256xf32>
    %c0_1 = arith.constant 0 : index
    %c0_2 = arith.constant 0 : index
    %2 = vector.load %arg1[%c0_1, %c0_2] : memref<104x32xf32, #tpu.memory_space<vmem>>, vector<10x20xf32>
    %c16 = arith.constant 16 : index
    %c0_3 = arith.constant 0 : index
    %3 = vector.load %arg1[%c16, %c0_3] : memref<104x32xf32, #tpu.memory_space<vmem>>, vector<4x10xf32>
    %c24 = arith.constant 24 : index
    %c0_4 = arith.constant 0 : index
    %4 = vector.load %arg1[%c24, %c0_4] : memref<104x32xf32, #tpu.memory_space<vmem>>, vector<2x4xf32>
    %c32 = arith.constant 32 : index
    %c0_5 = arith.constant 0 : index
    %5 = vector.load %arg1[%c32, %c0_5] : memref<104x32xf32, #tpu.memory_space<vmem>>, vector<4x2xf32>
    %c40 = arith.constant 40 : index
    %c0_6 = arith.constant 0 : index
    %6 = vector.load %arg1[%c40, %c0_6] : memref<104x32xf32, #tpu.memory_space<vmem>>, vector<10x4xf32>
    %c56 = arith.constant 56 : index
    %c0_7 = arith.constant 0 : index
    %7 = vector.load %arg1[%c56, %c0_7] : memref<104x32xf32, #tpu.memory_space<vmem>>, vector<20x10xf32>
    %c80 = arith.constant 80 : index
    %c0_8 = arith.constant 0 : index
    %8 = vector.load %arg1[%c80, %c0_8] : memref<104x32xf32, #tpu.memory_space<vmem>>, vector<10x1xf32>
    %c80_9 = arith.constant 80 : index
    %c1 = arith.constant 1 : index
    %9 = vector.load %arg1[%c80_9, %c1] : memref<104x32xf32, #tpu.memory_space<vmem>>, vector<4x1xf32>
    %c80_10 = arith.constant 80 : index
    %c2 = arith.constant 2 : index
    %10 = vector.load %arg1[%c80_10, %c2] : memref<104x32xf32, #tpu.memory_space<vmem>>, vector<2x1xf32>
    %c80_11 = arith.constant 80 : index
    %c3 = arith.constant 3 : index
    %11 = vector.load %arg1[%c80_11, %c3] : memref<104x32xf32, #tpu.memory_space<vmem>>, vector<4x1xf32>
    %c80_12 = arith.constant 80 : index
    %c4 = arith.constant 4 : index
    %12 = vector.load %arg1[%c80_12, %c4] : memref<104x32xf32, #tpu.memory_space<vmem>>, vector<10x1xf32>
    %c80_13 = arith.constant 80 : index
    %c5 = arith.constant 5 : index
    %13 = vector.load %arg1[%c80_13, %c5] : memref<104x32xf32, #tpu.memory_space<vmem>>, vector<20x1xf32>
    %cst = arith.constant dense<0.000000e+00> : vector<10x256xf32>
    %14 = tpu.matmul %2, %1, %cst {dimension_numbers = #tpu.dot_dimension_numbers<[1], [0], [0], [1], [0, 0, 1, 1], [], []>} : vector<10x20xf32>, vector<20x256xf32>, vector<10x256xf32> -> vector<10x256xf32>
    %15 = vector.broadcast %8 : vector<10x1xf32> to vector<10x256xf32>
    %16 = arith.addf %14, %15 : vector<10x256xf32>
    %cst_14 = arith.constant 0.000000e+00 : f32
    %17 = vector.broadcast %cst_14 : f32 to vector<10x256xf32>
    %18 = arith.maximumf %16, %17 : vector<10x256xf32>
    %cst_15 = arith.constant dense<0.000000e+00> : vector<4x256xf32>
    %19 = tpu.matmul %3, %18, %cst_15 {dimension_numbers = #tpu.dot_dimension_numbers<[1], [0], [0], [1], [0, 0, 1, 1], [], []>} : vector<4x10xf32>, vector<10x256xf32>, vector<4x256xf32> -> vector<4x256xf32>
    %20 = vector.broadcast %9 : vector<4x1xf32> to vector<4x256xf32>
    %21 = arith.addf %19, %20 : vector<4x256xf32>
    %cst_16 = arith.constant 0.000000e+00 : f32
    %22 = vector.broadcast %cst_16 : f32 to vector<4x256xf32>
    %23 = arith.maximumf %21, %22 : vector<4x256xf32>
    %cst_17 = arith.constant dense<0.000000e+00> : vector<2x256xf32>
    %24 = tpu.matmul %4, %23, %cst_17 {dimension_numbers = #tpu.dot_dimension_numbers<[1], [0], [0], [1], [0, 0, 1, 1], [], []>} : vector<2x4xf32>, vector<4x256xf32>, vector<2x256xf32> -> vector<2x256xf32>
    %25 = vector.broadcast %10 : vector<2x1xf32> to vector<2x256xf32>
    %26 = arith.addf %24, %25 : vector<2x256xf32>
    %cst_18 = arith.constant dense<0.000000e+00> : vector<4x256xf32>
    %27 = tpu.matmul %5, %26, %cst_18 {dimension_numbers = #tpu.dot_dimension_numbers<[1], [0], [0], [1], [0, 0, 1, 1], [], []>} : vector<4x2xf32>, vector<2x256xf32>, vector<4x256xf32> -> vector<4x256xf32>
    %28 = vector.broadcast %11 : vector<4x1xf32> to vector<4x256xf32>
    %29 = arith.addf %27, %28 : vector<4x256xf32>
    %cst_19 = arith.constant 0.000000e+00 : f32
    %30 = vector.broadcast %cst_19 : f32 to vector<4x256xf32>
    %31 = arith.maximumf %29, %30 : vector<4x256xf32>
    %cst_20 = arith.constant dense<0.000000e+00> : vector<10x256xf32>
    %32 = tpu.matmul %6, %31, %cst_20 {dimension_numbers = #tpu.dot_dimension_numbers<[1], [0], [0], [1], [0, 0, 1, 1], [], []>} : vector<10x4xf32>, vector<4x256xf32>, vector<10x256xf32> -> vector<10x256xf32>
    %33 = vector.broadcast %12 : vector<10x1xf32> to vector<10x256xf32>
    %34 = arith.addf %32, %33 : vector<10x256xf32>
    %cst_21 = arith.constant 0.000000e+00 : f32
    %35 = vector.broadcast %cst_21 : f32 to vector<10x256xf32>
    %36 = arith.maximumf %34, %35 : vector<10x256xf32>
    %cst_22 = arith.constant dense<0.000000e+00> : vector<20x256xf32>
    %37 = tpu.matmul %7, %36, %cst_22 {dimension_numbers = #tpu.dot_dimension_numbers<[1], [0], [0], [1], [0, 0, 1, 1], [], []>} : vector<20x10xf32>, vector<10x256xf32>, vector<20x256xf32> -> vector<20x256xf32>
    %38 = vector.broadcast %13 : vector<20x1xf32> to vector<20x256xf32>
    %39 = arith.addf %37, %38 : vector<20x256xf32>
    %40 = tpu.transpose %39, [1, 0] : vector<20x256xf32> -> vector<256x20xf32>
    %c0_23 = arith.constant 0 : index
    %c0_24 = arith.constant 0 : index
    %41 = vector.load %arg3[%c0_23, %c0_24] : memref<256x20xf32, #tpu.memory_space<vmem>>, vector<256x20xf32>
    tpu.vector_store %arg3[%c0_23, %c0_24], %40 {strides = array<i32>} : memref<256x20xf32, #tpu.memory_space<vmem>>, vector<256x20xf32>,
    %42 = tpu.transpose %26, [1, 0] : vector<2x256xf32> -> vector<256x2xf32>
    %c0_25 = arith.constant 0 : index
    %c0_26 = arith.constant 0 : index
    %43 = vector.load %arg4[%c0_25, %c0_26] : memref<256x2xf32, #tpu.memory_space<vmem>>, vector<256x2xf32>
    tpu.vector_store %arg4[%c0_25, %c0_26], %42 {strides = array<i32>} : memref<256x2xf32, #tpu.memory_space<vmem>>, vector<256x2xf32>,
    return
  }
  func.func @transform_0(%arg0: i32) -> (i32, i32) {
    %c0_i32 = arith.constant 0 : i32
    %c0_i32_0 = arith.constant 0 : i32
    %c0_i32_1 = arith.constant 0 : i32
    return %c0_i32, %c0_i32_0 : i32, i32
  }
  func.func @transform_1(%arg0: i32) -> (i32, i32) {
    %c0_i32 = arith.constant 0 : i32
    %c0_i32_0 = arith.constant 0 : i32
    return %arg0, %c0_i32 : i32, i32
  }
  func.func @transform_2(%arg0: i32) -> (i32, i32) {
    %c0_i32 = arith.constant 0 : i32
    %c0_i32_0 = arith.constant 0 : i32
    return %arg0, %c0_i32 : i32, i32
  }
  func.func @transform_3(%arg0: i32) -> (i32, i32) {
    %c0_i32 = arith.constant 0 : i32
    %c0_i32_0 = arith.constant 0 : i32
    return %arg0, %c0_i32 : i32, i32
  }
}

</mosaic_0001>

<bundles_post_ra>
// kernel: ae_forward.1
= control target key start
LH: loop header
LB: loop body
LE: loop exit
PB: predicated region body
PF: predicated region fallthrough
CT: control target
= control target key end

     0   :  { %s2310_s12 = smov 0   ;;  %s2312_s13 = smov 0   ;;  %s2932_s0 = inlined_call_operand.vmem [shape: f32[104,32], index: 0, kind: input, shape index: {}]   ;;  %s2933_s1 = inlined_call_operand.vmem [shape: f32[300,20], index: 1, kind: input, shape index: {}]   ;;  %s2934_s2 = inlined_call_operand.vmem [shape: f32[300,20], index: 2, kind: output, shape index: {0}]   ;;  %s2935_s3 = inlined_call_operand.vmem [shape: f32[300,2], index: 3, kind: output, shape index: {1}]  }
   0x1   :  { %s2314_s14 = smov 0  }
   0x2 LB: > { %s2323_s15 = sadd.s32 4294967295, %s2216_s14   ;;  %s2325_s16 = sadd.s32 1, %s2216_s14   ;;  %s2216_s14 = sphi %s2314_s14, %s2953_s14   ;;  %s2212_s13 = sphi %s2312_s13, %s2952_s13   ;;  %s2208_s12 = sphi %s2310_s12, %s2951_s12  }
   0x3   : > { %s65_s17 = ssub.s32 %s2216_s14, %s2325_s16  ;;  %s68_s18 = sadd.s32 1, %s2212_s13 }
   0x4   : > { %p66_p0 = scmp.eq.s32.totalorder %s65_s17, 0  ;;  %p78_p1 = scmp.ne.s32.totalorder %s2212_s13, %s2208_s12 }
   0x5   : > { %p79_p2 = scmp.eq.s32.totalorder %s2323_s15, 1  ;;  %p1772_p3 = scmp.ge.s32.totalorder %s2216_s14, 1 }
   0x6   : > { %s2333_s19 = scalar_select %p66_p0, %s2212_s13, %s68_s18  }
   0x7   : > { %p2335_p4 = por %p79_p2, %p78_p1  ;;  %p149_p5 = scmp.lt.s32.totalorder %s2216_s14, 3 }
   0x9   : > { %p150_p6 = pnand %p1772_p3, %p149_p5 }
   0xa   : > { %s2340_s21 = sshll.u32 (!%p150_p6), %s2323_s15, 5  ;;  %vm262_vm0 = vcmask (!%p150_p6), 162816   ;;  %v2345_v0 = vld [vmem:[%s2932_s0] sm:$0xff] (!%p150_p6)  ;;  %v2282_v1 = vmov (!%p150_p6), 0   ;;  %v2353_v2 = vld [vmem:[%s2932_s0 + $0x50] sm:$0xff] (!%p150_p6)  ;;  %v2283_v54 = vmov (!%p150_p6), 0.0  }
   0xb   : > { %153 = sbr.rel (%p150_p6) target bundleno = 1786 (0x6fa), region = 28  ;;  %p185_p7 = scmp.lt.s32.totalorder (!%p150_p6), %s2340_s21, 37  ;;  %1899 = vmatprep.mubr.msk.f32.mxu0 (!%p150_p6), %vm262_vm0, %v2345_v0  ;;  %2123 = vset.pattern.permute.xlu0 (!%p150_p6), %v2282_v1  ;;  %v2360_v3 = vld [vmem:[%s2932_s0 + $0x58] sm:$0x3] (!%p150_p6)  ;;  %vm2369_vm1 = vmpackc.low (!%p150_p6), %vm262_vm0, %vm262_vm0  ;;  %v237_v53 = vld [vmem:[%s2932_s0 + $0x8] sm:$0x3] (!%p150_p6) }
   0xc   : > { %254 = vperm.xlu0 (!%p150_p6), %2123, %v2353_v2   ;;  %526 = vmatprep.mubr.f32.mxu1 (!%p150_p6), %v2283_v54  ;;  %v248_v55 = vld [vmem:[%s2932_s0 + $0x50] sm:$0xf] (!%p150_p6)  ;;  %v2284_v56 = vmov (!%p150_p6), 1   ;;  %vm455_vm2 = vcmask (!%p150_p6), 1041408   ;;  %vm2285_vm3 = vmmov (!%p150_p6), 1   ;;  %vm451_vm5 = vcmask (!%p150_p6), 80896  }
   0xd   : > { %2124 = vset.pattern.permute.xlu1 (!%p150_p6), %v2284_v56  ;;  %vm2450_vm4 = vmpackc.low (!%p150_p6), %vm455_vm2, %vm2285_vm3  ;;  %vm544_vm6 = vcmask (!%p150_p6), 1043456   ;;  %vm540_vm7 = vcmask (!%p150_p6), 31744   ;;  %vm626_vm8 = vcmask (!%p150_p6), 15360   ;;  %s171_s14 = sand.u32 (!%p150_p6), 1, %s2208_s12  }
   0xe   : > { %448 = vperm.xlu1 (!%p150_p6), %2124, %v248_v55   ;;  %s2528_s17 = sshll.u32 (!%p150_p6), %s171_s14, 8 }
   0xf   : > { %s2531_s18 = scalar_lea.vmem (!%p150_p6), [#allocation2], %s2528_s17   ;;  %s2598_s12 = scalar_lea.vmem (!%p150_p6), [#allocation3], %s2528_s17  }
  0x10   : > { %259 = vperm.xlu0 (!%p150_p6), %2123, %v2360_v3  }
  0x12   : > { %s186_s26 = scalar_select %p185_p7, %s2340_s21, 37 }
  0x13   : > { %s1126_s22 = ssub.s32 (%p2335_p4), 38, %s2340_s21  ;;  %s1861_s23 = sshll.u32 (%p2335_p4), %s2323_s15, 8 }
  0x14   : > { %s1776_s29 = sshll.u32 %s186_s26, 3  ;;  %p1127_p8 = scmp.lt.s32.totalorder (%p2335_p4), %s1126_s22, 32 }
  0x15   : > { %s2365_s5 = scalar_lea.vmem %s2933_s1, %s1776_s29  ;;  %s2671_s26 = scalar_lea.vmem (%p2335_p4), %s2934_s2, %s1861_s23  }
  0x16   : > { %v220_v5 = vld [vmem:[%s2365_s5 + $0x80] sm:$0xff]  ;;  %v221_v6 = vld [vmem:[%s2365_s5 + $0x88] sm:$0xff]  ;;  %v222_v10 = vld [vmem:[%s2365_s5 + $0x90] sm:$0xff] }
  0x17   : > { %v204_v7 = vld [vmem:[%s2365_s5] sm:$0xff]  ;;  %v1903_v8 = vpack.c.bf16 %v221_v6, %v220_v5  ;;  %v205_v9 = vld [vmem:[%s2365_s5 + $0x8] sm:$0xff]  ;;  %v223_v11 = vld [vmem:[%s2365_s5 + $0x98] sm:$0xff] }
  0x18   : > { %v1906_v12 = vpack.c.bf16 %v205_v9, %v204_v7  ;;  %v1909_v13 = vpack.c.bf16 %v223_v11, %v222_v10  ;;  %v206_v14 = vld [vmem:[%s2365_s5 + $0x10] sm:$0xff]  ;;  %v207_v15 = vld [vmem:[%s2365_s5 + $0x18] sm:$0xff]  ;;  %v224_v16 = vld [vmem:[%s2365_s5 + $0xa0] sm:$0xff] }
  0x19   : > { %1905 = vmatprep.subr.msk.bf16.mxu0 %vm2369_vm1, %v1903_v8  ;;  %v225_v17 = vld [vmem:[%s2365_s5 + $0xa8] sm:$0xff]  ;;  %v1912_v18 = vpack.c.bf16 %v207_v15, %v206_v14  ;;  %v208_v20 = vld [vmem:[%s2365_s5 + $0x20] sm:$0xff]  ;;  %v226_v22 = vld [vmem:[%s2365_s5 + $0xb0] sm:$0xff]  ;;  %v2286_v14 = vmov 2  }
  0x1a   : > { %1908 = vmatpush3.bf16.xpose.msk.msra.mxu0 %vm2369_vm1, %v1906_v12  ;;  %v1915_v19 = vpack.c.bf16 %v225_v17, %v224_v16  ;;  %v209_v21 = vld [vmem:[%s2365_s5 + $0x28] sm:$0xff]  ;;  %v227_v23 = vld [vmem:[%s2365_s5 + $0xb8] sm:$0xff]  ;;  %v210_v26 = vld [vmem:[%s2365_s5 + $0x30] sm:$0xff]  ;;  %2125 = vset.pattern.permute.xlu1 %v2286_v14 }
  0x1b   : > { %1911 = vmatprep.subr.msk.bf16.mxu0 %vm2369_vm1, %v1909_v13  ;;  %v1918_v24 = vpack.c.bf16 %v209_v21, %v208_v20  ;;  %v1921_v25 = vpack.c.bf16 %v227_v23, %v226_v22  ;;  %v211_v27 = vld [vmem:[%s2365_s5 + $0x38] sm:$0xff]  ;;  %v228_v28 = vld [vmem:[%s2365_s5 + $0xc0] sm:$0xff]  ;;  %v229_v29 = vld [vmem:[%s2365_s5 + $0xc8] sm:$0xff]  ;;  %v2287_v23 = vmov 3  }
  0x1c   : > { %v1924_v30 = vpack.c.bf16 %v211_v27, %v210_v26  ;;  %v1927_v31 = vpack.c.bf16 %v229_v29, %v228_v28  ;;  %v212_v32 = vld [vmem:[%s2365_s5 + $0x40] sm:$0xff]  ;;  %v213_v33 = vld [vmem:[%s2365_s5 + $0x48] sm:$0xff]  ;;  %v230_v34 = vld [vmem:[%s2365_s5 + $0xd0] sm:$0xff]  ;;  %2126 = vset.pattern.permute.xlu0 %v2287_v23 }
  0x1d   : > { %v231_v35 = vld [vmem:[%s2365_s5 + $0xd8] sm:$0xff]  ;;  %v1930_v36 = vpack.c.bf16 %v213_v33, %v212_v32  ;;  %v214_v38 = vld [vmem:[%s2365_s5 + $0x50] sm:$0xff]  ;;  %v232_v40 = vld [vmem:[%s2365_s5 + $0xe0] sm:$0xff]  ;;  %623 = vperm.xlu0 %2126, %v248_v55  }
  0x1e   : > { %v1933_v37 = vpack.c.bf16 %v231_v35, %v230_v34  ;;  %v215_v39 = vld [vmem:[%s2365_s5 + $0x58] sm:$0xff]  ;;  %v233_v41 = vld [vmem:[%s2365_s5 + $0xe8] sm:$0xff]  ;;  %v216_v44 = vld [vmem:[%s2365_s5 + $0x60] sm:$0xff] }
  0x1f   : > { %v1936_v42 = vpack.c.bf16 %v215_v39, %v214_v38  ;;  %v1939_v43 = vpack.c.bf16 %v233_v41, %v232_v40  ;;  %v217_v45 = vld [vmem:[%s2365_s5 + $0x68] sm:$0xff]  ;;  %v234_v46 = vld [vmem:[%s2365_s5 + $0xf0] sm:$0xff]  ;;  %v235_v47 = vld [vmem:[%s2365_s5 + $0xf8] sm:$0xff]  ;;  %v2289_v40 = vmov 5  }
  0x20   : > { %v1942_v48 = vpack.c.bf16 %v217_v45, %v216_v44  ;;  %v1945_v49 = vpack.c.bf16 %v235_v47, %v234_v46  ;;  %v218_v50 = vld [vmem:[%s2365_s5 + $0x70] sm:$0xff]  ;;  %v219_v51 = vld [vmem:[%s2365_s5 + $0x78] sm:$0xff]  ;;  %v240_v29 = vld [vmem:[%s2932_s0 + $0x20] sm:$0xf] }
  0x21   : > { %v1948_v52 = vpack.c.bf16 %v219_v51, %v218_v50  ;;  %v238_v12 = vld [vmem:[%s2932_s0 + $0x10] sm:$0xf]  ;;  %v239_v22 = vld [vmem:[%s2932_s0 + $0x18] sm:$0x3]  ;;  %v241_v38 = vld [vmem:[%s2932_s0 + $0x28] sm:$0xff]  ;;  %2128 = vset.pattern.permute.xlu0 %v2289_v40 }
  0x22   : > { %1914 = vmatpush3.bf16.xpose.msk.msra.mxu0 %vm2369_vm1, %v1912_v18  ;;  %v249_v13 = vld [vmem:[%s2932_s0 + $0x50] sm:$0x3]  ;;  %v250_v39 = vld [vmem:[%s2932_s0 + $0x58] sm:$0xff]  ;;  %811 = vperm.xlu0 %2128, %v2353_v2   ;;  %v251_v41 = vld [vmem:[%s2932_s0 + $0x60] sm:$0xf] }
  0x23   : > { %1917 = vmatprep.subr.msk.bf16.mxu0 %vm2369_vm1, %v1915_v19  ;;  %537 = vperm.xlu1 %2125, %v249_v13  }
  0x2a   : > { %1920 = vmatpush3.bf16.xpose.msk.msra.mxu0 %vm2369_vm1, %v1918_v24 }
  0x2b   : > { %1923 = vmatprep.subr.msk.bf16.mxu0 %vm2369_vm1, %v1921_v25 }
  0x32   : > { %1926 = vmatpush3.bf16.xpose.msk.msra.mxu0 %vm2369_vm1, %v1924_v30  ;;  %v2288_v30 = vmov 4  }
  0x33   : > { %1929 = vmatprep.subr.msk.bf16.mxu0 %vm2369_vm1, %v1927_v31  ;;  %2127 = vset.pattern.permute.xlu1 %v2288_v30 }
  0x34   : > { %710 = vperm.xlu1 %2127, %v2353_v2  }
  0x38   : > { %714 = vperm.xlu1 %2127, %v2360_v3   ;;  %v242_v3 = vld [vmem:[%s2932_s0 + $0x30] sm:$0x3] }
  0x3a   : > { %1932 = vmatpush3.bf16.xpose.msk.msra.mxu0 %vm2369_vm1, %v1930_v36 }
  0x3b   : > { %1935 = vmatprep.subr.msk.bf16.mxu0 %vm2369_vm1, %v1933_v37 }
  0x3c   : > { %2129 = vset.pattern.permute.xlu1 %v2289_v40 }
  0x3d   : > { %816 = vperm.xlu1 %2129, %v250_v39  }
  0x41   : > { %821 = vperm.xlu1 %2129, %v251_v41  }
  0x42   : > { %1938 = vmatpush3.bf16.xpose.msk.msra.mxu0 %vm2369_vm1, %v1936_v42 }
  0x43   : > { %1941 = vmatprep.subr.msk.bf16.mxu0 %vm2369_vm1, %v1939_v43 }
  0x4a   : > { %1944 = vmatpush3.bf16.xpose.msk.msra.mxu0 %vm2369_vm1, %v1942_v48 }
  0x4b   : > { %1947 = vmatprep.subr.msk.bf16.mxu0 %vm2369_vm1, %v1945_v49 }
  0x52   : > { %1950 = vmatpush3.bf16.xpose.msk.msra.mxu0 %vm2369_vm1, %v1948_v52 }
  0x59   : > { %1900 = vmatmul.mubr.msk.f32.vlgmr.msra.gmra.mrb[0].mxu0 %vm262_vm0, %v2345_v0 }
  0x5a   : > { %1901 = vmatprep.mubr.msk.f32.mxu0 %vm262_vm0, %v237_v53 }
  0x5d   : > { %1902 = vmatmul.mubr.msk.f32.gmra.mrb[2].mxu0 %vm262_vm0, %v237_v53 }
  0x8b   : > { %v255_v57 = vpop.permute.xlu0 %254 }
  0x8d   : > { %v449_v15 = vpop.permute.xlu1 %448 }
  0x8f   : > { %v260_v61 = vpop.permute.xlu0 %259 }
  0x9c   : > { %v624_v31 = vpop.permute.xlu0 %623 }
  0xa2   : > { %v538_v24 = vpop.permute.xlu1 %537 }
  0xb3   : > { %v711_v42 = vpop.permute.xlu1 %710 }
  0xb7   : > { %v715_v46 = vpop.permute.xlu1 %714 }
 0x12c   : > { %v431_v58 = vpop.f32.mrb[0].mxu0 }
 0x12d   : > { %v433_v59 = vpop.f32.mrb[1].mxu0  ;;  %v432_v60 = vadd.f32 %v431_v58, %v255_v57  ;;  %v243_v58 = vld [vmem:[%s2932_s0 + $0x38] sm:$0xff] }
 0x12e   : > { %v434_v62 = vadd.f32 %v433_v59, %v255_v57  ;;  %v244_v59 = vld [vmem:[%s2932_s0 + $0x40] sm:$0xff] }
 0x12f   : > { %v442_v5 = vmax.f32 %v432_v60, 0.0  ;;  %v245_v60 = vld [vmem:[%s2932_s0 + $0x48] sm:$0xf] }
 0x130   : > { %v437_v63 = vpop.f32.mrb[2].mxu0  ;;  %v443_v7 = vmax.f32 %v434_v62, 0.0 }
 0x131   : > { %v438_v0 = vadd.f32 %v437_v63, %v260_v61  ;;  %v439_v1 = vpop.f32.mrb[3].mxu0 }
 0x132   : > { %v440_v4 = vadd.f32 %v439_v1, %v260_v61  ;;  %v812_v61 = vpop.permute.xlu0 %811 }
 0x133   : > { %v444_v6 = vmax.f32 %v438_v0, 0.0 }
 0x134   : > { %v445_v8 = vmax.f32 %v440_v4, 0.0  ;;  %v817_v4 = vpop.permute.xlu1 %816 }
 0x135   : > { %v1954_v9 = vpack.c.bf16 %v444_v6, %v442_v5 }
 0x136   : > { %v1951_v11 = vpack.c.bf16 %v445_v8, %v443_v7 }
 0x138   : > { %1953 = vmatprep.subr.msk.bf16.mxu1 %vm2450_vm4, %v1951_v11 }
 0x139   : > { %1956 = vmatpush1.bf16.msk.msra.mxu1 %vm2450_vm4, %v1954_v9 }
 0x13c   : > { %1813 = vmatmul.mubr.msk.f32.vlgmr.msra.gmra.mrb[0].mxu1 %vm451_vm5, %v238_v12 }
 0x13d   : > { %615 = vmatprep.mubr.f32.mxu1 %v2283_v54 }
 0x20f   : > { %v528_v16 = vpop.f32.mrb[0].mxu1 }
 0x210   : > { %v529_v17 = vadd.f32 %v528_v16, %v449_v15  ;;  %v530_v18 = vpop.f32.mrb[1].mxu1 }
 0x211   : > { %v531_v19 = vadd.f32 %v530_v18, %v449_v15 }
 0x212   : > { %v533_v21 = vmax.f32 %v529_v17, 0.0 }
 0x213   : > { %v534_v20 = vmax.f32 %v531_v19, 0.0 }
 0x215   : > { %1814 = vmatprep.subr.msk.mxu1 %vm544_vm6, %v534_v20 }
 0x216   : > { %1815 = vmatpush1.msk.msra.mxu1 %vm544_vm6, %v533_v21 }
 0x217   : > { %1816 = vmatmul.mubr.msk.f32.vlgmr.msra.gmra.mrb[2].mxu1 %vm540_vm7, %v239_v22 }
 0x218   : > { %700 = vmatprep.mubr.f32.mxu1 %v2283_v54 }
 0x2ea   : > { %v617_v25 = vpop.f32.mrb[2].mxu1 }
 0x2eb   : > { %v619_v26 = vpop.f32.mrb[3].mxu1  ;;  %v2475_v28 = vadd.f32 %v617_v25, %v538_v24 }
 0x2ec   : > { %v2473_v27 = vadd.f32 %v619_v26, %v538_v24 }
 0x2ee   : > { %1817 = vmatprep.subr.msk.mxu1 %vm455_vm2, %v2473_v27 }
 0x2ef   : > { %1818 = vmatpush1.msk.msra.mxu1 %vm455_vm2, %v2475_v28 }
 0x2f0   : > { %1819 = vmatmul.mubr.msk.f32.vlgmr.msra.gmra.mrb[4].mxu1 %vm626_vm8, %v240_v29 }
 0x2f1   : > { %793 = vmatprep.mubr.f32.mxu1 %v2283_v54 }
 0x3c3   : > { %v702_v32 = vpop.f32.mrb[4].mxu1 }
 0x3c4   : > { %v703_v33 = vadd.f32 %v702_v32, %v624_v31  ;;  %v704_v34 = vpop.f32.mrb[5].mxu1 }
 0x3c5   : > { %v705_v35 = vadd.f32 %v704_v34, %v624_v31 }
 0x3c6   : > { %v707_v37 = vmax.f32 %v703_v33, 0.0 }
 0x3c7   : > { %v708_v36 = vmax.f32 %v705_v35, 0.0 }
 0x3c9   : > { %1820 = vmatprep.subr.msk.mxu1 %vm544_vm6, %v708_v36 }
 0x3ca   : > { %1821 = vmatpush1.msk.msra.mxu1 %vm544_vm6, %v707_v37 }
 0x3cb   : > { %1822 = vmatmul.mubr.msk.f32.vlgmr.msra.gmra.mrb[6].mxu1 %vm540_vm7, %v241_v38 }
 0x3cc   : > { %799 = vmatprep.mubr.f32.mxu1 %v2283_v54 }
 0x3cf   : > { %1823 = vmatmul.mubr.msk.f32.gmra.mrb[8].mxu1 %vm540_vm7, %v242_v3 }
 0x3d0   : > { %903 = vmatprep.mubr.f32.mxu1 %v2283_v54 }
 0x49e   : > { %v795_v43 = vpop.f32.mrb[6].mxu1 }
 0x49f   : > { %v797_v44 = vpop.f32.mrb[7].mxu1  ;;  %v796_v45 = vadd.f32 %v795_v43, %v711_v42 }
 0x4a0   : > { %v798_v47 = vadd.f32 %v797_v44, %v711_v42 }
 0x4a1   : > { %v806_v52 = vmax.f32 %v796_v45, 0.0 }
 0x4a2   : > { %v801_v48 = vpop.f32.mrb[8].mxu1  ;;  %v807_v55 = vmax.f32 %v798_v47, 0.0 }
 0x4a3   : > { %v802_v49 = vadd.f32 %v801_v48, %v715_v46  ;;  %v803_v50 = vpop.f32.mrb[9].mxu1 }
 0x4a4   : > { %v804_v51 = vadd.f32 %v803_v50, %v715_v46 }
 0x4a5   : > { %v808_v53 = vmax.f32 %v802_v49, 0.0 }
 0x4a6   : > { %v809_v2 = vmax.f32 %v804_v51, 0.0 }
 0x4a7   : > { %v1960_v56 = vpack.c.bf16 %v808_v53, %v806_v52 }
 0x4a8   : > { %v1957_v57 = vpack.c.bf16 %v809_v2, %v807_v55 }
 0x4aa   : > { %1959 = vmatprep.subr.msk.bf16.mxu1 %vm2450_vm4, %v1957_v57 }
 0x4ab   : > { %1962 = vmatpush1.bf16.msk.msra.mxu1 %vm2450_vm4, %v1960_v56 }
 0x4ae   : > { %1826 = vmatmul.mubr.msk.f32.vlgmr.msra.gmra.mrb[10].mxu1 %vm451_vm5, %v243_v58 }
 0x4af   : > { %909 = vmatprep.mubr.f32.mxu1 %v2283_v54 }
 0x4b2   : > { %1827 = vmatmul.mubr.msk.f32.gmra.mrb[12].mxu1 %vm451_vm5, %v244_v59 }
 0x4b3   : > { %915 = vmatprep.mubr.f32.mxu1 %v2283_v54  ;;  %v822_v54 = vpop.permute.xlu1 %821 }
 0x4b6   : > { %1828 = vmatmul.mubr.msk.f32.gmra.mrb[14].mxu1 %vm451_vm5, %v245_v60 }
 0x581   : > { %v905_v62 = vpop.f32.mrb[10].mxu1 }
 0x582   : > { %v906_v63 = vadd.f32 %v905_v62, %v812_v61  ;;  %v907_v0 = vpop.f32.mrb[11].mxu1 }
 0x583   : > { %v908_v1 = vadd.f32 %v907_v0, %v812_v61 }
 0x584   : > { %922 = vxpose.xlu0.b32.start [1/3] (short) %v906_v63, 128 }
 0x585   : > { %v911_v5 = vpop.f32.mrb[12].mxu1  ;;  %954 = vxpose.xlu1.b32.start [1/3] (short) %v908_v1, 128 }
 0x586   : > { %v912_v6 = vadd.f32 %v911_v5, %v817_v4  ;;  %v913_v7 = vpop.f32.mrb[13].mxu1 }
 0x587   : > { %v914_v8 = vadd.f32 %v913_v7, %v817_v4 }
 0x588   : > { %923 = vxpose.xlu0.b32.cont [2/3] (short) %v912_v6, 128 }
 0x589   : > { %v917_v9 = vpop.f32.mrb[14].mxu1  ;;  %955 = vxpose.xlu1.b32.cont [2/3] (short) %v914_v8, 128 }
 0x58a   : > { %v918_v10 = vadd.f32 %v917_v9, %v822_v54  ;;  %v919_v11 = vpop.f32.mrb[15].mxu1 }
 0x58b   : > { %v920_v12 = vadd.f32 %v919_v11, %v822_v54 }
 0x58c   : > { %924 = vxpose.xlu0.b32.end [3/3] (short) %v918_v10, 128 }
 0x58d   : > { %956 = vxpose.xlu1.b32.end [3/3] (short) %v920_v12, 128 }
 0x5c1   : > { %1018 = vxpose.xlu0.b32.start.end [1/1] (short) %v2475_v28, 128 }
 0x5c2   : > { %1050 = vxpose.xlu1.b32.start.end [1/1] (short) %v2473_v27, 128 }
 0x604   : > { %v938_v13 = vpop.trf.xlu0 }
 0x605   : > { %v970_v14 = vpop.trf.xlu1  ;;  %986 = vst.msk [vmem:[%s2531_s18] sm:$0xff] %vm262_vm0, %v938_v13 }
 0x606   : > { %1002 = vst.msk [vmem:[%s2531_s18 + $0x80] sm:$0xff] %vm262_vm0, %v970_v14 }
 0x608   : > { %v939_v15 = vpop.trf.xlu0 }
 0x609   : > { %v971_v16 = vpop.trf.xlu1  ;;  %987 = vst.msk [vmem:[%s2531_s18 + $0x8] sm:$0xff] %vm262_vm0, %v939_v15 }
 0x60a   : > { %1003 = vst.msk [vmem:[%s2531_s18 + $0x88] sm:$0xff] %vm262_vm0, %v971_v16 }
 0x60c   : > { %v940_v17 = vpop.trf.xlu0 }
 0x60d   : > { %v972_v18 = vpop.trf.xlu1  ;;  %988 = vst.msk [vmem:[%s2531_s18 + $0x10] sm:$0xff] %vm262_vm0, %v940_v17 }
 0x60e   : > { %1004 = vst.msk [vmem:[%s2531_s18 + $0x90] sm:$0xff] %vm262_vm0, %v972_v18 }
 0x610   : > { %v941_v19 = vpop.trf.xlu0 }
 0x611   : > { %v973_v20 = vpop.trf.xlu1  ;;  %989 = vst.msk [vmem:[%s2531_s18 + $0x18] sm:$0xff] %vm262_vm0, %v941_v19 }
 0x612   : > { %1005 = vst.msk [vmem:[%s2531_s18 + $0x98] sm:$0xff] %vm262_vm0, %v973_v20 }
 0x614   : > { %v942_v21 = vpop.trf.xlu0 }
 0x615   : > { %v974_v22 = vpop.trf.xlu1  ;;  %990 = vst.msk [vmem:[%s2531_s18 + $0x20] sm:$0xff] %vm262_vm0, %v942_v21 }
 0x616   : > { %1006 = vst.msk [vmem:[%s2531_s18 + $0xa0] sm:$0xff] %vm262_vm0, %v974_v22 }
 0x618   : > { %v943_v23 = vpop.trf.xlu0 }
 0x619   : > { %v975_v24 = vpop.trf.xlu1  ;;  %991 = vst.msk [vmem:[%s2531_s18 + $0x28] sm:$0xff] %vm262_vm0, %v943_v23 }
 0x61a   : > { %1007 = vst.msk [vmem:[%s2531_s18 + $0xa8] sm:$0xff] %vm262_vm0, %v975_v24 }
 0x61c   : > { %v944_v25 = vpop.trf.xlu0 }
 0x61d   : > { %v976_v26 = vpop.trf.xlu1  ;;  %992 = vst.msk [vmem:[%s2531_s18 + $0x30] sm:$0xff] %vm262_vm0, %v944_v25 }
 0x61e   : > { %1008 = vst.msk [vmem:[%s2531_s18 + $0xb0] sm:$0xff] %vm262_vm0, %v976_v26 }
 0x620   : > { %v945_v27 = vpop.trf.xlu0 }
 0x621   : > { %v977_v28 = vpop.trf.xlu1  ;;  %993 = vst.msk [vmem:[%s2531_s18 + $0x38] sm:$0xff] %vm262_vm0, %v945_v27 }
 0x622   : > { %1009 = vst.msk [vmem:[%s2531_s18 + $0xb8] sm:$0xff] %vm262_vm0, %v977_v28 }
 0x624   : > { %v946_v29 = vpop.trf.xlu0 }
 0x625   : > { %v978_v30 = vpop.trf.xlu1  ;;  %994 = vst.msk [vmem:[%s2531_s18 + $0x40] sm:$0xff] %vm262_vm0, %v946_v29 }
 0x626   : > { %1010 = vst.msk [vmem:[%s2531_s18 + $0xc0] sm:$0xff] %vm262_vm0, %v978_v30 }
 0x628   : > { %v947_v31 = vpop.trf.xlu0 }
 0x629   : > { %v979_v32 = vpop.trf.xlu1  ;;  %995 = vst.msk [vmem:[%s2531_s18 + $0x48] sm:$0xff] %vm262_vm0, %v947_v31 }
 0x62a   : > { %1011 = vst.msk [vmem:[%s2531_s18 + $0xc8] sm:$0xff] %vm262_vm0, %v979_v32 }
 0x62c   : > { %v948_v33 = vpop.trf.xlu0 }
 0x62d   : > { %v980_v34 = vpop.trf.xlu1  ;;  %996 = vst.msk [vmem:[%s2531_s18 + $0x50] sm:$0xff] %vm262_vm0, %v948_v33 }
 0x62e   : > { %1012 = vst.msk [vmem:[%s2531_s18 + $0xd0] sm:$0xff] %vm262_vm0, %v980_v34 }
 0x630   : > { %v949_v35 = vpop.trf.xlu0 }
 0x631   : > { %v981_v36 = vpop.trf.xlu1  ;;  %997 = vst.msk [vmem:[%s2531_s18 + $0x58] sm:$0xff] %vm262_vm0, %v949_v35 }
 0x632   : > { %1013 = vst.msk [vmem:[%s2531_s18 + $0xd8] sm:$0xff] %vm262_vm0, %v981_v36 }
 0x634   : > { %v950_v37 = vpop.trf.xlu0 }
 0x635   : > { %v982_v38 = vpop.trf.xlu1  ;;  %998 = vst.msk [vmem:[%s2531_s18 + $0x60] sm:$0xff] %vm262_vm0, %v950_v37 }
 0x636   : > { %1014 = vst.msk [vmem:[%s2531_s18 + $0xe0] sm:$0xff] %vm262_vm0, %v982_v38 }
 0x638   : > { %v951_v3 = vpop.trf.xlu0 }
 0x639   : > { %v983_v39 = vpop.trf.xlu1  ;;  %999 = vst.msk [vmem:[%s2531_s18 + $0x68] sm:$0xff] %vm262_vm0, %v951_v3 }
 0x63a   : > { %1015 = vst.msk [vmem:[%s2531_s18 + $0xe8] sm:$0xff] %vm262_vm0, %v983_v39 }
 0x63c   : > { %v952_v40 = vpop.trf.xlu0 }
 0x63d   : > { %v984_v41 = vpop.trf.xlu1  ;;  %1000 = vst.msk [vmem:[%s2531_s18 + $0x70] sm:$0xff] %vm262_vm0, %v952_v40 }
 0x63e   : > { %1016 = vst.msk [vmem:[%s2531_s18 + $0xf0] sm:$0xff] %vm262_vm0, %v984_v41 }
 0x640   : > { %v953_v42 = vpop.trf.xlu0 }
 0x641   : > { %v985_v43 = vpop.trf.xlu1  ;;  %1001 = vst.msk [vmem:[%s2531_s18 + $0x78] sm:$0xff] %vm262_vm0, %v953_v42 }
 0x642   : > { %1017 = vst.msk [vmem:[%s2531_s18 + $0xf8] sm:$0xff] %vm262_vm0, %v985_v43 }
 0x644   : > { %v1034_v44 = vpop.trf.xlu0 }
 0x645   : > { %v1066_v45 = vpop.trf.xlu1  ;;  %1082 = vst.msk [vmem:[%s2598_s12] sm:$0xff] %vm626_vm8, %v1034_v44 }
 0x646   : > { %1098 = vst.msk [vmem:[%s2598_s12 + $0x80] sm:$0xff] %vm626_vm8, %v1066_v45 }
 0x648   : > { %v1035_v46 = vpop.trf.xlu0 }
 0x649   : > { %v1067_v47 = vpop.trf.xlu1  ;;  %1083 = vst.msk [vmem:[%s2598_s12 + $0x8] sm:$0xff] %vm626_vm8, %v1035_v46 }
 0x64a   : > { %1099 = vst.msk [vmem:[%s2598_s12 + $0x88] sm:$0xff] %vm626_vm8, %v1067_v47 }
 0x64c   : > { %v1036_v48 = vpop.trf.xlu0 }
 0x64d   : > { %v1068_v49 = vpop.trf.xlu1  ;;  %1084 = vst.msk [vmem:[%s2598_s12 + $0x10] sm:$0xff] %vm626_vm8, %v1036_v48 }
 0x64e   : > { %1100 = vst.msk [vmem:[%s2598_s12 + $0x90] sm:$0xff] %vm626_vm8, %v1068_v49 }
 0x650   : > { %v1037_v50 = vpop.trf.xlu0 }
 0x651   : > { %v1069_v51 = vpop.trf.xlu1  ;;  %1085 = vst.msk [vmem:[%s2598_s12 + $0x18] sm:$0xff] %vm626_vm8, %v1037_v50 }
 0x652   : > { %1101 = vst.msk [vmem:[%s2598_s12 + $0x98] sm:$0xff] %vm626_vm8, %v1069_v51 }
 0x654   : > { %v1038_v52 = vpop.trf.xlu0 }
 0x655   : > { %v1070_v53 = vpop.trf.xlu1  ;;  %1086 = vst.msk [vmem:[%s2598_s12 + $0x20] sm:$0xff] %vm626_vm8, %v1038_v52 }
 0x656   : > { %1102 = vst.msk [vmem:[%s2598_s12 + $0xa0] sm:$0xff] %vm626_vm8, %v1070_v53 }
 0x658   : > { %v1039_v55 = vpop.trf.xlu0 }
 0x659   : > { %v1071_v2 = vpop.trf.xlu1  ;;  %1087 = vst.msk [vmem:[%s2598_s12 + $0x28] sm:$0xff] %vm626_vm8, %v1039_v55 }
 0x65a   : > { %1103 = vst.msk [vmem:[%s2598_s12 + $0xa8] sm:$0xff] %vm626_vm8, %v1071_v2 }
 0x65c   : > { %v1040_v56 = vpop.trf.xlu0 }
 0x65d   : > { %v1072_v57 = vpop.trf.xlu1  ;;  %1088 = vst.msk [vmem:[%s2598_s12 + $0x30] sm:$0xff] %vm626_vm8, %v1040_v56 }
 0x65e   : > { %1104 = vst.msk [vmem:[%s2598_s12 + $0xb0] sm:$0xff] %vm626_vm8, %v1072_v57 }
 0x660   : > { %v1041_v58 = vpop.trf.xlu0 }
 0x661   : > { %v1073_v59 = vpop.trf.xlu1  ;;  %1089 = vst.msk [vmem:[%s2598_s12 + $0x38] sm:$0xff] %vm626_vm8, %v1041_v58 }
 0x662   : > { %1105 = vst.msk [vmem:[%s2598_s12 + $0xb8] sm:$0xff] %vm626_vm8, %v1073_v59 }
 0x664   : > { %v1042_v60 = vpop.trf.xlu0 }
 0x665   : > { %v1074_v61 = vpop.trf.xlu1  ;;  %1090 = vst.msk [vmem:[%s2598_s12 + $0x40] sm:$0xff] %vm626_vm8, %v1042_v60 }
 0x666   : > { %1106 = vst.msk [vmem:[%s2598_s12 + $0xc0] sm:$0xff] %vm626_vm8, %v1074_v61 }
 0x668   : > { %v1043_v62 = vpop.trf.xlu0 }
 0x669   : > { %v1075_v63 = vpop.trf.xlu1  ;;  %1091 = vst.msk [vmem:[%s2598_s12 + $0x48] sm:$0xff] %vm626_vm8, %v1043_v62 }
 0x66a   : > { %1107 = vst.msk [vmem:[%s2598_s12 + $0xc8] sm:$0xff] %vm626_vm8, %v1075_v63 }
 0x66c   : > { %v1044_v0 = vpop.trf.xlu0 }
 0x66d   : > { %v1076_v1 = vpop.trf.xlu1  ;;  %1092 = vst.msk [vmem:[%s2598_s12 + $0x50] sm:$0xff] %vm626_vm8, %v1044_v0 }
 0x66e   : > { %1108 = vst.msk [vmem:[%s2598_s12 + $0xd0] sm:$0xff] %vm626_vm8, %v1076_v1 }
 0x670   : > { %v1045_v4 = vpop.trf.xlu0 }
 0x671   : > { %v1077_v5 = vpop.trf.xlu1  ;;  %1093 = vst.msk [vmem:[%s2598_s12 + $0x58] sm:$0xff] %vm626_vm8, %v1045_v4 }
 0x672   : > { %1109 = vst.msk [vmem:[%s2598_s12 + $0xd8] sm:$0xff] %vm626_vm8, %v1077_v5 }
 0x674   : > { %v1046_v6 = vpop.trf.xlu0 }
 0x675   : > { %v1078_v7 = vpop.trf.xlu1  ;;  %1094 = vst.msk [vmem:[%s2598_s12 + $0x60] sm:$0xff] %vm626_vm8, %v1046_v6 }
 0x676   : > { %1110 = vst.msk [vmem:[%s2598_s12 + $0xe0] sm:$0xff] %vm626_vm8, %v1078_v7 }
 0x678   : > { %v1047_v8 = vpop.trf.xlu0 }
 0x679   : > { %v1079_v54 = vpop.trf.xlu1  ;;  %1095 = vst.msk [vmem:[%s2598_s12 + $0x68] sm:$0xff] %vm626_vm8, %v1047_v8 }
 0x67a   : > { %1111 = vst.msk [vmem:[%s2598_s12 + $0xe8] sm:$0xff] %vm626_vm8, %v1079_v54 }
 0x67c   : > { %v1048_v9 = vpop.trf.xlu0  ;;  %1124 = sbr.rel (!%p2335_p4) target bundleno = 1723 (0x6bb), region = 32 }
 0x67d   : > { %v1080_v10 = vpop.trf.xlu1  ;;  %1096 = vst.msk [vmem:[%s2598_s12 + $0x70] sm:$0xff] %vm626_vm8, %v1048_v9 }
 0x67e   : > { %1112 = vst.msk [vmem:[%s2598_s12 + $0xf0] sm:$0xff] %vm626_vm8, %v1080_v10 }
 0x680   : > { %v1049_v11 = vpop.trf.xlu0 }
 0x681   : > { %v1081_v12 = vpop.trf.xlu1  ;;  %1097 = vst.msk [vmem:[%s2598_s12 + $0x78] sm:$0xff] %vm626_vm8, %v1049_v11 }
 0x682   : > { %1113 = vst.msk [vmem:[%s2598_s12 + $0xf8] sm:$0xff] %vm626_vm8, %v1081_v12 }
 0x683   : > { %s2955_s22 = smov (!%p1127_p8, %s1126_s22), 32 }
 0x684   : > { %s1832_s27 = sshll.u32 %s2955_s22, 7 }
 0x685   : > { %p1835_p9 = scmp.eq.s32.totalorder %s1832_s27, 0 }
 0x686   : > { %s2677_s28 = sshrl.u32 (!%p1835_p9), %s2955_s22, 5 }
 0x687   : > { %1135 = sbr.rel (%p1835_p9) target bundleno = 1723 (0x6bb), region = 36  ;;  %p1836_p10 = scmp.le.s32.totalorder (!%p1835_p9), %s2677_s28, 0 }
 0x68e   : > { %1688 = sbr.rel (%p1836_p10) target bundleno = 1702 (0x6a6), region = 184  ;;  %s2941_s29 = smov (!%p1836_p10), %s2671_s26 }
 0x68f   : > { %s2942_s30 = smov (!%p1836_p10), %s2531_s18  ;;  %s2686_s4 = smov (!%p1836_p10), 0  }
 0x690   : > { %s2688_s5 = smov (!%p1836_p10), 0  }
 0x695 LB: >> { %v1259_v13 = vld [vmem:[%s2224_s30] sm:$0xff]  ;;  %v1261_v14 = vld [vmem:[%s2224_s30 + $0x8] sm:$0xff]  ;;  %v1263_v15 = vld [vmem:[%s2224_s30 + $0x10] sm:$0xff]  ;;  %s1323_s6 = sadd.s32 1, %s2228_s4  ;;  %s1253_s5 = sadd.s32 1, %s2232_s5   ;;  %s2232_s5 = sphi %s2688_s5, %s1253_s5   ;;  %s2228_s4 = sphi %s2686_s4, %s2945_s4   ;;  %s2224_s30 = sphi %s2942_s30, %s2944_s30   ;;  %s2220_s29 = sphi %s2941_s29, %s2943_s29  }
 0x696   : >> { %1260 = vst [vmem:[%s2220_s29] sm:$0xff] %v1259_v13  ;;  %1262 = vst [vmem:[%s2220_s29 + $0x8] sm:$0xff] %v1261_v14  ;;  %v1265_v16 = vld [vmem:[%s2224_s30 + $0x18] sm:$0xff]  ;;  %v1267_v17 = vld [vmem:[%s2224_s30 + $0x20] sm:$0xff]  ;;  %p1324_p11 = scmp.ge.s32.totalorder %s1323_s6, %s2677_s28  ;;  %p1252_p12 = scmp.ge.s32.totalorder %s1253_s5, %s2677_s28 }
 0x697   : >> { %1264 = vst [vmem:[%s2220_s29 + $0x10] sm:$0xff] %v1263_v15  ;;  %v1269_v18 = vld [vmem:[%s2224_s30 + $0x28] sm:$0xff]  ;;  %1266 = vst [vmem:[%s2220_s29 + $0x18] sm:$0xff] %v1265_v16  ;;  %v1271_v19 = vld [vmem:[%s2224_s30 + $0x30] sm:$0xff] }
 0x698   : >> { %1268 = vst [vmem:[%s2220_s29 + $0x20] sm:$0xff] %v1267_v17  ;;  %1270 = vst [vmem:[%s2220_s29 + $0x28] sm:$0xff] %v1269_v18  ;;  %v1273_v20 = vld [vmem:[%s2224_s30 + $0x38] sm:$0xff]  ;;  %v1275_v21 = vld [vmem:[%s2224_s30 + $0x40] sm:$0xff]  ;;  %s2957_s6 = smov (%p1324_p11, %s1323_s6), 0 }
 0x699   : >> { %1272 = vst [vmem:[%s2220_s29 + $0x30] sm:$0xff] %v1271_v19  ;;  %1274 = vst [vmem:[%s2220_s29 + $0x38] sm:$0xff] %v1273_v20  ;;  %v1277_v22 = vld [vmem:[%s2224_s30 + $0x48] sm:$0xff]  ;;  %v1279_v23 = vld [vmem:[%s2224_s30 + $0x50] sm:$0xff]  ;;  %s1837_s7 = sshll.u32 %s2957_s6, 8  ;;  %s2945_s4 = smov %s2957_s6 }
 0x69a   : >> { %1276 = vst [vmem:[%s2220_s29 + $0x40] sm:$0xff] %v1275_v21  ;;  %v1281_v24 = vld [vmem:[%s2224_s30 + $0x58] sm:$0xff]  ;;  %1278 = vst [vmem:[%s2220_s29 + $0x48] sm:$0xff] %v1277_v22  ;;  %v1283_v25 = vld [vmem:[%s2224_s30 + $0x60] sm:$0xff]  ;;  %s2744_s8 = scalar_lea.vmem %s2531_s18, %s1837_s7 [#allocation2]   ;;  %s1329_s9 = scalar_lea.vmem %s2671_s26, %s1837_s7  }
 0x69b   : >> { %1280 = vst [vmem:[%s2220_s29 + $0x50] sm:$0xff] %v1279_v23  ;;  %1282 = vst [vmem:[%s2220_s29 + $0x58] sm:$0xff] %v1281_v24  ;;  %v1285_v26 = vld [vmem:[%s2224_s30 + $0x68] sm:$0xff]  ;;  %v1287_v27 = vld [vmem:[%s2224_s30 + $0x70] sm:$0xff] }
 0x69c   : >> { %1284 = vst [vmem:[%s2220_s29 + $0x60] sm:$0xff] %v1283_v25  ;;  %1286 = vst [vmem:[%s2220_s29 + $0x68] sm:$0xff] %v1285_v26  ;;  %v1289_v28 = vld [vmem:[%s2224_s30 + $0x78] sm:$0xff]  ;;  %v1291_v29 = vld [vmem:[%s2224_s30 + $0x80] sm:$0xff] }
 0x69d   : >> { %1288 = vst [vmem:[%s2220_s29 + $0x70] sm:$0xff] %v1287_v27  ;;  %v1293_v30 = vld [vmem:[%s2224_s30 + $0x88] sm:$0xff]  ;;  %1290 = vst [vmem:[%s2220_s29 + $0x78] sm:$0xff] %v1289_v28  ;;  %v1295_v31 = vld [vmem:[%s2224_s30 + $0x90] sm:$0xff] }
 0x69e   : >> { %1292 = vst [vmem:[%s2220_s29 + $0x80] sm:$0xff] %v1291_v29  ;;  %1294 = vst [vmem:[%s2220_s29 + $0x88] sm:$0xff] %v1293_v30  ;;  %v1297_v32 = vld [vmem:[%s2224_s30 + $0x98] sm:$0xff]  ;;  %v1299_v33 = vld [vmem:[%s2224_s30 + $0xa0] sm:$0xff] }
 0x69f   : >> { %1296 = vst [vmem:[%s2220_s29 + $0x90] sm:$0xff] %v1295_v31  ;;  %1298 = vst [vmem:[%s2220_s29 + $0x98] sm:$0xff] %v1297_v32  ;;  %v1301_v34 = vld [vmem:[%s2224_s30 + $0xa8] sm:$0xff]  ;;  %v1303_v35 = vld [vmem:[%s2224_s30 + $0xb0] sm:$0xff]  ;;  %1255 = sbr.rel (!%p1252_p12) target bundleno = 1685 (0x695), region = 190 }
 0x6a0   : >> { %1300 = vst [vmem:[%s2220_s29 + $0xa0] sm:$0xff] %v1299_v33  ;;  %v1305_v36 = vld [vmem:[%s2224_s30 + $0xb8] sm:$0xff]  ;;  %1302 = vst [vmem:[%s2220_s29 + $0xa8] sm:$0xff] %v1301_v34  ;;  %v1307_v37 = vld [vmem:[%s2224_s30 + $0xc0] sm:$0xff] }
 0x6a1   : >> { %1304 = vst [vmem:[%s2220_s29 + $0xb0] sm:$0xff] %v1303_v35  ;;  %1306 = vst [vmem:[%s2220_s29 + $0xb8] sm:$0xff] %v1305_v36  ;;  %v1309_v38 = vld [vmem:[%s2224_s30 + $0xc8] sm:$0xff]  ;;  %v1311_v3 = vld [vmem:[%s2224_s30 + $0xd0] sm:$0xff] }
 0x6a2   : >> { %1308 = vst [vmem:[%s2220_s29 + $0xc0] sm:$0xff] %v1307_v37  ;;  %1310 = vst [vmem:[%s2220_s29 + $0xc8] sm:$0xff] %v1309_v38  ;;  %v1313_v39 = vld [vmem:[%s2224_s30 + $0xd8] sm:$0xff]  ;;  %v1315_v40 = vld [vmem:[%s2224_s30 + $0xe0] sm:$0xff] }
 0x6a3   : >> { %1312 = vst [vmem:[%s2220_s29 + $0xd0] sm:$0xff] %v1311_v3  ;;  %v1317_v41 = vld [vmem:[%s2224_s30 + $0xe8] sm:$0xff]  ;;  %1314 = vst [vmem:[%s2220_s29 + $0xd8] sm:$0xff] %v1313_v39  ;;  %v1319_v42 = vld [vmem:[%s2224_s30 + $0xf0] sm:$0xff] }
 0x6a4   : >> { %1316 = vst [vmem:[%s2220_s29 + $0xe0] sm:$0xff] %v1315_v40  ;;  %1318 = vst [vmem:[%s2220_s29 + $0xe8] sm:$0xff] %v1317_v41  ;;  %v1321_v43 = vld [vmem:[%s2224_s30 + $0xf8] sm:$0xff]  ;;  %s2944_s30 = smov %s2744_s8 }
 0x6a5   : >> { %1320 = vst [vmem:[%s2220_s29 + $0xf0] sm:$0xff] %v1319_v42  ;;  %1322 = vst [vmem:[%s2220_s29 + $0xf8] sm:$0xff] %v1321_v43  ;;  %s2943_s29 = smov %s1329_s9 }
 0x6a6 PF: > { %s2785_s10 = sand.u32 31, %s2955_s22   ;;  %s1862_s11 = sshll.u32 %s2677_s28, 8 }
 0x6a7   : > { %s1334_s14 = scalar_lea.vmem %s2531_s18, %s1862_s11 [#allocation2]   ;;  %s1336_s17 = scalar_lea.vmem %s2671_s26, %s1862_s11  }
 0x6a8   : > { %p1842_p13 = scmp.le.s32.totalorder %s2785_s10, 0 }
 0x6a9   : > { %s2234_s23 = smov (!%p1842_p13), %s1336_s17   ;;  %s2238_s24 = smov (!%p1842_p13), %s1334_s14  }
 0x6aa   : > { %1702 = sbr.rel (%p1842_p13) target bundleno = 1723 (0x6bb), region = 195  ;;  %s2242_s25 = smov (!%p1842_p13), 0  }
 0x6ab   : > { %s2246_s27 = smov (!%p1842_p13), 0  }
 0x6b1 LB: >> { %v1346_v44 = vld [vmem:[%s2240_s24] sm:$0xff]  ;;  %s1348_s22 = sadd.s32 1, %s2244_s25  ;;  %s1340_s27 = sadd.s32 1, %s2248_s27   ;;  %s2248_s27 = sphi %s2246_s27, %s1340_s27   ;;  %s2244_s25 = sphi %s2242_s25, %s2243_s25   ;;  %s2240_s24 = sphi %s2238_s24, %s1353_s24   ;;  %s2236_s23 = sphi %s2234_s23, %s1354_s23  }
 0x6b2   : >> { %1347 = vst [vmem:[%s2236_s23] sm:$0xff] %v1346_v44  ;;  %p1349_p0 = scmp.ge.s32.totalorder %s1348_s22, %s2785_s10  ;;  %p1339_p1 = scmp.ge.s32.totalorder %s1340_s27, %s2785_s10 }
 0x6b4   : >> { %s2959_s22 = smov (%p1349_p0, %s1348_s22), 0  ;;  %1342 = sbr.rel (!%p1339_p1) target bundleno = 1713 (0x6b1), region = 201 }
 0x6b5   : >> { %s1843_s18 = sshll.u32 %s2959_s22, 3  ;;  %s2243_s25 = smov %s2959_s22  }
 0x6b6   : >> { %s1353_s24 = scalar_lea.vmem %s1334_s14, %s1843_s18 [#allocation2]   ;;  %s1354_s23 = scalar_lea.vmem %s1336_s17, %s1843_s18  }
 0x6bb PF: > { %1360 = sbr.rel (!%p2335_p4) target bundleno = 1786 (0x6fa), region = 84  ;;  %s1362_s26 = ssub.s32 (%p2335_p4), 38, %s2340_s21 }
 0x6bc   : > { %s1864_s28 = sshll.u32 (%p2335_p4), %s2323_s15, 8  ;;  %p1363_p2 = scmp.lt.s32.totalorder (%p2335_p4), %s1362_s26, 32 }
 0x6bd   : > { %s2800_s4 = scalar_lea.vmem (%p2335_p4), %s2935_s3, %s1864_s28  }
 0x6c2   : > { %s2961_s26 = smov (!%p1363_p2, %s1362_s26), 32 }
 0x6c3   : > { %s1846_s5 = sshll.u32 %s2961_s26, 7 }
 0x6c4   : > { %p1849_p3 = scmp.eq.s32.totalorder %s1846_s5, 0 }
 0x6c5   : > { %s2806_s6 = sshrl.u32 (!%p1849_p3), %s2961_s26, 5 }
 0x6c6   : > { %1371 = sbr.rel (%p1849_p3) target bundleno = 1786 (0x6fa), region = 88  ;;  %p1850_p4 = scmp.le.s32.totalorder (!%p1849_p3), %s2806_s6, 0 }
 0x6cd   : > { %1716 = sbr.rel (%p1850_p4) target bundleno = 1765 (0x6e5), region = 206  ;;  %s2946_s15 = smov (!%p1850_p4), %s2800_s4 }
 0x6ce   : > { %s2947_s20 = smov (!%p1850_p4), %s2598_s12  ;;  %s2815_s21 = smov (!%p1850_p4), 0  }
 0x6cf   : > { %s2817_s7 = smov (!%p1850_p4), 0  }
 0x6d4 LB: >> { %v1495_v45 = vld [vmem:[%s2256_s20] sm:$0xff]  ;;  %v1497_v46 = vld [vmem:[%s2256_s20 + $0x8] sm:$0xff]  ;;  %v1499_v47 = vld [vmem:[%s2256_s20 + $0x10] sm:$0xff]  ;;  %s1559_s8 = sadd.s32 1, %s2260_s21  ;;  %s1489_s7 = sadd.s32 1, %s2264_s7   ;;  %s2264_s7 = sphi %s2817_s7, %s1489_s7   ;;  %s2260_s21 = sphi %s2815_s21, %s2950_s21   ;;  %s2256_s20 = sphi %s2947_s20, %s2949_s20   ;;  %s2252_s15 = sphi %s2946_s15, %s2948_s15  }
 0x6d5   : >> { %1496 = vst [vmem:[%s2252_s15] sm:$0xff] %v1495_v45  ;;  %1498 = vst [vmem:[%s2252_s15 + $0x8] sm:$0xff] %v1497_v46  ;;  %v1501_v48 = vld [vmem:[%s2256_s20 + $0x18] sm:$0xff]  ;;  %v1503_v49 = vld [vmem:[%s2256_s20 + $0x20] sm:$0xff]  ;;  %p1560_p5 = scmp.ge.s32.totalorder %s1559_s8, %s2806_s6  ;;  %p1488_p6 = scmp.ge.s32.totalorder %s1489_s7, %s2806_s6 }
 0x6d6   : >> { %1500 = vst [vmem:[%s2252_s15 + $0x10] sm:$0xff] %v1499_v47  ;;  %v1505_v50 = vld [vmem:[%s2256_s20 + $0x28] sm:$0xff]  ;;  %1502 = vst [vmem:[%s2252_s15 + $0x18] sm:$0xff] %v1501_v48  ;;  %v1507_v51 = vld [vmem:[%s2256_s20 + $0x30] sm:$0xff] }
 0x6d7   : >> { %1504 = vst [vmem:[%s2252_s15 + $0x20] sm:$0xff] %v1503_v49  ;;  %1506 = vst [vmem:[%s2252_s15 + $0x28] sm:$0xff] %v1505_v50  ;;  %v1509_v52 = vld [vmem:[%s2256_s20 + $0x38] sm:$0xff]  ;;  %v1511_v53 = vld [vmem:[%s2256_s20 + $0x40] sm:$0xff]  ;;  %s2963_s8 = smov (%p1560_p5, %s1559_s8), 0 }
 0x6d8   : >> { %1508 = vst [vmem:[%s2252_s15 + $0x30] sm:$0xff] %v1507_v51  ;;  %1510 = vst [vmem:[%s2252_s15 + $0x38] sm:$0xff] %v1509_v52  ;;  %v1513_v55 = vld [vmem:[%s2256_s20 + $0x48] sm:$0xff]  ;;  %v1515_v2 = vld [vmem:[%s2256_s20 + $0x50] sm:$0xff]  ;;  %s1851_s9 = sshll.u32 %s2963_s8, 8  ;;  %s2950_s21 = smov %s2963_s8 }
 0x6d9   : >> { %1512 = vst [vmem:[%s2252_s15 + $0x40] sm:$0xff] %v1511_v53  ;;  %v1517_v56 = vld [vmem:[%s2256_s20 + $0x58] sm:$0xff]  ;;  %1514 = vst [vmem:[%s2252_s15 + $0x48] sm:$0xff] %v1513_v55  ;;  %v1519_v57 = vld [vmem:[%s2256_s20 + $0x60] sm:$0xff]  ;;  %s2873_s10 = scalar_lea.vmem %s2598_s12, %s1851_s9 [#allocation3]   ;;  %s1565_s11 = scalar_lea.vmem %s2800_s4, %s1851_s9  }
 0x6da   : >> { %1516 = vst [vmem:[%s2252_s15 + $0x50] sm:$0xff] %v1515_v2  ;;  %1518 = vst [vmem:[%s2252_s15 + $0x58] sm:$0xff] %v1517_v56  ;;  %v1521_v58 = vld [vmem:[%s2256_s20 + $0x68] sm:$0xff]  ;;  %v1523_v59 = vld [vmem:[%s2256_s20 + $0x70] sm:$0xff] }
 0x6db   : >> { %1520 = vst [vmem:[%s2252_s15 + $0x60] sm:$0xff] %v1519_v57  ;;  %1522 = vst [vmem:[%s2252_s15 + $0x68] sm:$0xff] %v1521_v58  ;;  %v1525_v60 = vld [vmem:[%s2256_s20 + $0x78] sm:$0xff]  ;;  %v1527_v61 = vld [vmem:[%s2256_s20 + $0x80] sm:$0xff] }
 0x6dc   : >> { %1524 = vst [vmem:[%s2252_s15 + $0x70] sm:$0xff] %v1523_v59  ;;  %v1529_v62 = vld [vmem:[%s2256_s20 + $0x88] sm:$0xff]  ;;  %1526 = vst [vmem:[%s2252_s15 + $0x78] sm:$0xff] %v1525_v60  ;;  %v1531_v63 = vld [vmem:[%s2256_s20 + $0x90] sm:$0xff] }
 0x6dd   : >> { %1528 = vst [vmem:[%s2252_s15 + $0x80] sm:$0xff] %v1527_v61  ;;  %1530 = vst [vmem:[%s2252_s15 + $0x88] sm:$0xff] %v1529_v62  ;;  %v1533_v0 = vld [vmem:[%s2256_s20 + $0x98] sm:$0xff]  ;;  %v1535_v1 = vld [vmem:[%s2256_s20 + $0xa0] sm:$0xff] }
 0x6de   : >> { %1532 = vst [vmem:[%s2252_s15 + $0x90] sm:$0xff] %v1531_v63  ;;  %1534 = vst [vmem:[%s2252_s15 + $0x98] sm:$0xff] %v1533_v0  ;;  %v1537_v4 = vld [vmem:[%s2256_s20 + $0xa8] sm:$0xff]  ;;  %v1539_v5 = vld [vmem:[%s2256_s20 + $0xb0] sm:$0xff]  ;;  %1491 = sbr.rel (!%p1488_p6) target bundleno = 1748 (0x6d4), region = 212 }
 0x6df   : >> { %1536 = vst [vmem:[%s2252_s15 + $0xa0] sm:$0xff] %v1535_v1  ;;  %v1541_v6 = vld [vmem:[%s2256_s20 + $0xb8] sm:$0xff]  ;;  %1538 = vst [vmem:[%s2252_s15 + $0xa8] sm:$0xff] %v1537_v4  ;;  %v1543_v7 = vld [vmem:[%s2256_s20 + $0xc0] sm:$0xff] }
 0x6e0   : >> { %1540 = vst [vmem:[%s2252_s15 + $0xb0] sm:$0xff] %v1539_v5  ;;  %1542 = vst [vmem:[%s2252_s15 + $0xb8] sm:$0xff] %v1541_v6  ;;  %v1545_v8 = vld [vmem:[%s2256_s20 + $0xc8] sm:$0xff]  ;;  %v1547_v54 = vld [vmem:[%s2256_s20 + $0xd0] sm:$0xff] }
 0x6e1   : >> { %1544 = vst [vmem:[%s2252_s15 + $0xc0] sm:$0xff] %v1543_v7  ;;  %1546 = vst [vmem:[%s2252_s15 + $0xc8] sm:$0xff] %v1545_v8  ;;  %v1549_v9 = vld [vmem:[%s2256_s20 + $0xd8] sm:$0xff]  ;;  %v1551_v10 = vld [vmem:[%s2256_s20 + $0xe0] sm:$0xff] }
 0x6e2   : >> { %1548 = vst [vmem:[%s2252_s15 + $0xd0] sm:$0xff] %v1547_v54  ;;  %v1553_v11 = vld [vmem:[%s2256_s20 + $0xe8] sm:$0xff]  ;;  %1550 = vst [vmem:[%s2252_s15 + $0xd8] sm:$0xff] %v1549_v9  ;;  %v1555_v12 = vld [vmem:[%s2256_s20 + $0xf0] sm:$0xff] }
 0x6e3   : >> { %1552 = vst [vmem:[%s2252_s15 + $0xe0] sm:$0xff] %v1551_v10  ;;  %1554 = vst [vmem:[%s2252_s15 + $0xe8] sm:$0xff] %v1553_v11  ;;  %v1557_v13 = vld [vmem:[%s2256_s20 + $0xf8] sm:$0xff]  ;;  %s2949_s20 = smov %s2873_s10 }
 0x6e4   : >> { %1556 = vst [vmem:[%s2252_s15 + $0xf0] sm:$0xff] %v1555_v12  ;;  %1558 = vst [vmem:[%s2252_s15 + $0xf8] sm:$0xff] %v1557_v13  ;;  %s2948_s15 = smov %s1565_s11 }
 0x6e5 PF: > { %s2914_s14 = sand.u32 31, %s2961_s26   ;;  %s1865_s17 = sshll.u32 %s2806_s6, 8 }
 0x6e6   : > { %s1570_s23 = scalar_lea.vmem %s2598_s12, %s1865_s17 [#allocation3]   ;;  %s1572_s24 = scalar_lea.vmem %s2800_s4, %s1865_s17  }
 0x6e7   : > { %p1856_p7 = scmp.le.s32.totalorder %s2914_s14, 0 }
 0x6e8   : > { %s2266_s25 = smov (!%p1856_p7), %s1572_s24   ;;  %s2270_s27 = smov (!%p1856_p7), %s1570_s23  }
 0x6e9   : > { %1730 = sbr.rel (%p1856_p7) target bundleno = 1786 (0x6fa), region = 217  ;;  %s2274_s22 = smov (!%p1856_p7), 0  }
 0x6ea   : > { %s2278_s18 = smov (!%p1856_p7), 0  }
 0x6f0 LB: >> { %v1582_v14 = vld [vmem:[%s2272_s27] sm:$0xff]  ;;  %s1584_s26 = sadd.s32 1, %s2276_s22  ;;  %s1576_s18 = sadd.s32 1, %s2280_s18   ;;  %s2280_s18 = sphi %s2278_s18, %s1576_s18   ;;  %s2276_s22 = sphi %s2274_s22, %s2275_s22   ;;  %s2272_s27 = sphi %s2270_s27, %s1589_s27   ;;  %s2268_s25 = sphi %s2266_s25, %s1590_s25  }
 0x6f1   : >> { %1583 = vst [vmem:[%s2268_s25] sm:$0xff] %v1582_v14  ;;  %p1585_p8 = scmp.ge.s32.totalorder %s1584_s26, %s2914_s14  ;;  %p1575_p9 = scmp.ge.s32.totalorder %s1576_s18, %s2914_s14 }
 0x6f3   : >> { %s2965_s26 = smov (%p1585_p8, %s1584_s26), 0  ;;  %1578 = sbr.rel (!%p1575_p9) target bundleno = 1776 (0x6f0), region = 223 }
 0x6f4   : >> { %s1857_s12 = sshll.u32 %s2965_s26, 3  ;;  %s2275_s22 = smov %s2965_s26  }
 0x6f5   : >> { %s1589_s27 = scalar_lea.vmem %s1570_s23, %s1857_s12 [#allocation3]   ;;  %s1590_s25 = scalar_lea.vmem %s1572_s24, %s1857_s12  }
 0x6fa PF: > { %p11_p10 = scmp.ge.s32.totalorder %s2325_s16, 4   ;;  %s2951_s12 = smov %s2212_s13 }
 0x6fb   : > { %s2952_s13 = smov %s2333_s19  ;;  %s2953_s14 = smov %s2325_s16 }
 0x6fc   :  { %13 = sbr.rel (!%p11_p10) target bundleno = 2 (0x2), region = 234 }

</bundles_post_ra>
